<compile_context>
chip_gen: v6e
topology: v6e:2x2x1
jax: 0.10.0
libtpu: 0.0.40
codegen_flags: <defaults>
</compile_context>

<pallas_src>
import math
from functools import partial

import jax
import jax.numpy as jnp
from jax.experimental import pallas as pl
from jax.experimental.pallas import tpu as pltpu


def _round_up(x, m):
    return (x + m - 1) // m * m


# ----------------------------- Pallas kernel --------------------------------
def decoder_answer_kernel(z_ref, w1_ref, b1_ref, m_ref, bc_ref, o_ref):
    # lin1 (MXU) + bias + relu.  z is cast to the weight dtype *inside* the
    # kernel (no wrapper-side XLA pass over z); bias/ReLU stay in f32.
    h = jnp.dot(z_ref[...].astype(w1_ref.dtype), w1_ref[...],
                preferred_element_type=jnp.float32)
    h = jnp.maximum(h + b1_ref[...], 0.0)
    # ConvTranspose3d lowered to a second MXU matmul + scalar bias (SMEM read).
    out = jnp.dot(h.astype(m_ref.dtype), m_ref[...],
                  preferred_element_type=jnp.float32)
    o_ref[...] = (out + bc_ref[0]).astype(o_ref.dtype)


# --------------------------- parameter glue (runs once) ----------------------
def build_convT_matrix(wc, nx, ny):
    """Dense M s.t. flat_out = flat_hidden @ M reproduces
    ConvTranspose3d(C, 1, (1, kx, ky), stride=1, pad=0) on a (C, 1, nx, ny) input.

    wc: (C, kx, ky) -> M: (C*nx*ny, (nx+kx-1)*(ny+ky-1)).
    Row order (c, p, q) row-major, matching PyTorch's x.view(B, C, 1, nx, ny).
    """
    C, kx, ky = wc.shape
    ox, oy = nx + kx - 1, ny + ky - 1
    M = jnp.zeros((C, nx, ny, ox, oy), dtype=jnp.float32)
    for p in range(nx):
        for q in range(ny):
            M = M.at[:, p, q, p:p + kx, q:q + ky].set(wc)
    return M.reshape(C * nx * ny, ox * oy)


def prepare_decoder_params(w1, b1, wc, bc, *, nseq, nx, ny,
                           compute_dtype=jnp.bfloat16):
    """Build the fused decoder parameters once (hoisted out of the forward path).

    compute_dtype=bf16 (default) keeps w1/M in the MXU-native dtype; bias/ReLU
    and accumulation remain f32 inside the kernel.
    """
    assert nseq == 1, "scatter-matrix lowering only implemented for nseq == 1"
    M = build_convT_matrix(wc.astype(jnp.float32), nx, ny).astype(compute_dtype)
    return dict(
        w1=w1.astype(compute_dtype),               # (latent, lin_out)
        b1=b1.reshape(1, -1).astype(jnp.float32),  # (1, lin_out)  f32 bias/relu
        M=M,                                       # (lin_out, ox*oy)
        bc=bc.reshape(1).astype(jnp.float32),      # (1,) scalar, SMEM
    )


# ----------------------------- tile selection --------------------------------
def _choose_batch_tile(B, tm, align):
    """Rows per grid step.

    * B <= 1024: one full-extent block (full-dim blocks are exempt from the
      8/16-row alignment rule) -> minimal latency, no pad copies.
    * B > 1024: aligned tiles of at most `tm` rows, sized so the grid has at
      least two steps (so the "parallel" batch axis can use both v7x
      TensorCores and the two halves' DMA overlaps).
    """
    if B <= min(tm, 1024):
        return B
    return max(align, min(tm, _round_up(pl.cdiv(B, 2), align)))


# ------------------------------- forward -------------------------------------
@partial(jax.jit, static_argnames=("nseq", "ox", "oy", "tm", "out_dtype"))
def decoder_answer_forward(z, params, *, nseq, ox, oy, tm=2048,
                           out_dtype=jnp.float32):
    w1, b1, M, bc = params["w1"], params["b1"], params["M"], params["bc"]
    B, latent = z.shape
    lin_out = w1.shape[1]
    out_dim = M.shape[1]

    # Cap TM so double-buffered (TM x 256 f32 out + TM x 32 in) tiles stay well
    # under v7x's 32 MiB default scoped-VMEM limit (64 MiB physical VMEM).
    tm = min(tm, 8192)
    # bf16 packs 16 rows per sublane tile; f32 packs 8.
    align = 16 if w1.dtype == jnp.bfloat16 else 8
    TM = _choose_batch_tile(B, tm, align)
    grid = pl.cdiv(B, TM)

    out_flat = pl.pallas_call(
        decoder_answer_kernel,
        out_shape=jax.ShapeDtypeStruct((B, out_dim), out_dtype),
        grid=(grid,),
        in_specs=[
            pl.BlockSpec((TM, latent), lambda i: (i, 0)),          # z (tiled)
            pl.BlockSpec((latent, lin_out), lambda i: (0, 0),
                         pipeline_mode=pl.Buffered(1)),            # w1 resident
            pl.BlockSpec((1, lin_out), lambda i: (0, 0),
                         pipeline_mode=pl.Buffered(1)),            # b1 resident
            pl.BlockSpec((lin_out, out_dim), lambda i: (0, 0),
                         pipeline_mode=pl.Buffered(1)),            # M resident
            pl.BlockSpec(memory_space=pltpu.MemorySpace.SMEM),     # bc scalar
        ],
        out_specs=pl.BlockSpec((TM, out_dim), lambda i: (i, 0)),
        compiler_params=pltpu.CompilerParams(
            dimension_semantics=("parallel",)),
    )(z, w1, b1, M, bc)

    # Back to PyTorch NCDHW convention: (B, out_ch=1, nseq, ox, oy).
    return out_flat.reshape(B, 1, nseq, ox, oy)


# ------------------------------ reference ------------------------------------
def reference_forward(z, w1, b1, wc, bc, *, hidden_ch, nseq, nx, ny, kx, ky):
    B = z.shape[0]
    ox, oy = nx + kx - 1, ny + ky - 1
    h = jnp.maximum(z @ w1 + b1, 0.0)
    x = h.reshape(B, hidden_ch, nseq, nx, ny)
    out = jnp.zeros((B, 1, nseq, ox, oy), dtype=jnp.float32)
    for p in range(nx):
        for q in range(ny):
            contrib = jnp.einsum("bc,cij->bij", x[:, :, 0, p, q], wc)
            out = out.at[:, 0, 0, p:p + kx, q:q + ky].add(contrib)
    return out + bc[0]


# --------------------------------- main ---------------------------------------
if __name__ == "__main__":
    # module hyperparameters (matching PyTorch __init__ with embed_dim=256)
    embed_dim = 256
    latent_dim = 32
    hidden_ch = 32
    kseq, kx, ky = 1, 15, 15                # kernel_size = (3,15,15) -> k4seq=1
    seq_size = 1                            # self.seq_size = 1 in the module
    x_dim = int(math.sqrt(embed_dim))       # 16
    y_dim = int(embed_dim / x_dim)          # 16
    nx = x_dim - kx + 1                     # 2
    ny = y_dim - ky + 1                     # 2
    nseq = seq_size - kseq + 1              # 1
    ox, oy = nx + kx - 1, ny + ky - 1       # 16, 16
    lin_out = nx * ny * nseq * hidden_ch    # 128

    key = jax.random.PRNGKey(0)
    k_z, k_w1, k_b1, k_wc, k_bc, k_z2 = jax.random.split(key, 6)

    # lin1: Linear(latent_dim, lin_out); stored as (in, out) for z @ W1
    w1 = 0.05 * jax.random.normal(k_w1, (latent_dim, lin_out), dtype=jnp.float32)
    b1 = 0.05 * jax.random.normal(k_b1, (lin_out,), dtype=jnp.float32)
    # convT4: ConvTranspose3d(hidden_ch, 1, (1,15,15)) -> weight (C,1,1,kx,ky)
    wc = 0.05 * jax.random.normal(k_wc, (hidden_ch, kx, ky), dtype=jnp.float32)
    bc = 0.05 * jax.random.normal(k_bc, (1,), dtype=jnp.float32)

    # ---- small-batch latency path: B=4, single full-extent block ------------
    B = 4
    z = jax.random.normal(k_z, (B, latent_dim), dtype=jnp.float32)
    ref = jax.block_until_ready(reference_forward(
        z, w1, b1, wc, bc,
        hidden_ch=hidden_ch, nseq=nseq, nx=nx, ny=ny, kx=kx, ky=ky))

    # f32 path (exact match with the reference)
    params_f32 = prepare_decoder_params(
        w1, b1, wc, bc, nseq=nseq, nx=nx, ny=ny, compute_dtype=jnp.float32)
    out_f32 = jax.block_until_ready(
        decoder_answer_forward(z, params_f32, nseq=nseq, ox=ox, oy=oy))
    assert out_f32.shape == (B, 1, nseq, x_dim, y_dim), out_f32.shape
    assert jnp.allclose(out_f32, ref, atol=1e-4, rtol=1e-4), \
        float(jnp.max(jnp.abs(out_f32 - ref)))

    # default bf16 weight/activation path (f32 accumulate, f32 output)
    params_bf16 = prepare_decoder_params(
        w1, b1, wc, bc, nseq=nseq, nx=nx, ny=ny)
    out_bf16 = jax.block_until_ready(
        decoder_answer_forward(z, params_bf16, nseq=nseq, ox=ox, oy=oy))
    assert out_bf16.shape == (B, 1, nseq, x_dim, y_dim), out_bf16.shape
    assert jnp.allclose(out_bf16, ref, atol=3e-2, rtol=3e-2), \
        float(jnp.max(jnp.abs(out_bf16 - ref)))

    # ---- multi-step grid path: B > 1024 -> >=2 parallel steps, partial tail,
    #      bf16 output option ---------------------------------------------------
    B2 = 1100
    z2 = jax.random.normal(k_z2, (B2, latent_dim), dtype=jnp.float32)
    ref2 = jax.block_until_ready(reference_forward(
        z2, w1, b1, wc, bc,
        hidden_ch=hidden_ch, nseq=nseq, nx=nx, ny=ny, kx=kx, ky=ky))
    out2 = jax.block_until_ready(
        decoder_answer_forward(z2, params_bf16, nseq=nseq, ox=ox, oy=oy,
                               out_dtype=jnp.bfloat16))
    assert out2.shape == (B2, 1, nseq, x_dim, y_dim), out2.shape
    err2 = float(jnp.max(jnp.abs(out2.astype(jnp.float32) - ref2)))
    assert jnp.allclose(out2.astype(jnp.float32), ref2, atol=5e-2, rtol=5e-2), err2

    print("KERNEL_OK")
</pallas_src>

<mosaic_0001>
module attributes {stable_mosaic.version = 11 : i64} {
  func.func @decoder_answer_kernel(%arg0: i32, %arg1: memref<4x32xf32, #tpu.memory_space<vmem>>, %arg2: memref<32x128xf32, #tpu.memory_space<vmem>>, %arg3: memref<1x128xf32, #tpu.memory_space<vmem>>, %arg4: memref<128x256xf32, #tpu.memory_space<vmem>>, %arg5: memref<1xf32, #tpu.memory_space<smem>>, %arg6: memref<4x256xf32, #tpu.memory_space<vmem>>) attributes {dimension_semantics = [#tpu.dimension_semantics<parallel>], iteration_bounds = array<i64: 1>, scalar_prefetch = 0 : i64, scratch_operands = 0 : i64, tpu.core_type = #tpu.core_type<tc>, window_params = [{transform_indices = @transform_0, window_bounds = array<i64: 4, 32>}, {pipeline_mode = #tpu.pipeline_mode<synchronous>, transform_indices = @transform_1, window_bounds = array<i64: 32, 128>}, {pipeline_mode = #tpu.pipeline_mode<synchronous>, transform_indices = @transform_2, window_bounds = array<i64: 1, 128>}, {pipeline_mode = #tpu.pipeline_mode<synchronous>, transform_indices = @transform_3, window_bounds = array<i64: 128, 256>}, {transform_indices = @transform_4, window_bounds = array<i64: 1>}, {transform_indices = @transform_5, window_bounds = array<i64: 4, 256>}]} {
    %c0 = arith.constant 0 : index
    %c0_0 = arith.constant 0 : index
    %0 = vector.load %arg1[%c0, %c0_0] : memref<4x32xf32, #tpu.memory_space<vmem>>, vector<4x32xf32>
    %c0_1 = arith.constant 0 : index
    %c0_2 = arith.constant 0 : index
    %1 = vector.load %arg2[%c0_1, %c0_2] : memref<32x128xf32, #tpu.memory_space<vmem>>, vector<32x128xf32>
    %cst = arith.constant dense<0.000000e+00> : vector<4x128xf32>
    %2 = tpu.matmul %0, %1, %cst {dimension_numbers = #tpu.dot_dimension_numbers<[1], [0], [0], [1], [0, 0, 1, 1], [], []>} : vector<4x32xf32>, vector<32x128xf32>, vector<4x128xf32> -> vector<4x128xf32>
    %c0_3 = arith.constant 0 : index
    %c0_4 = arith.constant 0 : index
    %3 = vector.load %arg3[%c0_3, %c0_4] : memref<1x128xf32, #tpu.memory_space<vmem>>, vector<1x128xf32>
    %4 = vector.broadcast %3 : vector<1x128xf32> to vector<4x128xf32>
    %5 = arith.addf %2, %4 : vector<4x128xf32>
    %cst_5 = arith.constant 0.000000e+00 : f32
    %6 = vector.broadcast %cst_5 : f32 to vector<4x128xf32>
    %7 = arith.maximumf %5, %6 : vector<4x128xf32>
    %c0_6 = arith.constant 0 : index
    %c0_7 = arith.constant 0 : index
    %8 = vector.load %arg4[%c0_6, %c0_7] : memref<128x256xf32, #tpu.memory_space<vmem>>, vector<128x256xf32>
    %cst_8 = arith.constant dense<0.000000e+00> : vector<4x256xf32>
    %9 = tpu.matmul %7, %8, %cst_8 {dimension_numbers = #tpu.dot_dimension_numbers<[1], [0], [0], [1], [0, 0, 1, 1], [], []>} : vector<4x128xf32>, vector<128x256xf32>, vector<4x256xf32> -> vector<4x256xf32>
    %c0_9 = arith.constant 0 : index
    %10 = memref.load %arg5[%c0_9] : memref<1xf32, #tpu.memory_space<smem>>
    %11 = vector.broadcast %10 : f32 to vector<4x256xf32>
    %12 = arith.addf %9, %11 : vector<4x256xf32>
    %c0_10 = arith.constant 0 : index
    %c0_11 = arith.constant 0 : index
    %13 = vector.load %arg6[%c0_10, %c0_11] : memref<4x256xf32, #tpu.memory_space<vmem>>, vector<4x256xf32>
    tpu.vector_store %arg6[%c0_10, %c0_11], %12 {strides = array<i32>} : memref<4x256xf32, #tpu.memory_space<vmem>>, vector<4x256xf32>,
    return
  }
  func.func @transform_0(%arg0: i32) -> (i32, i32) {
    %c0_i32 = arith.constant 0 : i32
    %c0_i32_0 = arith.constant 0 : i32
    return %arg0, %c0_i32 : i32, i32
  }
  func.func @transform_1(%arg0: i32) -> (i32, i32) {
    %c0_i32 = arith.constant 0 : i32
    %c0_i32_0 = arith.constant 0 : i32
    %c0_i32_1 = arith.constant 0 : i32
    return %c0_i32, %c0_i32_0 : i32, i32
  }
  func.func @transform_2(%arg0: i32) -> (i32, i32) {
    %c0_i32 = arith.constant 0 : i32
    %c0_i32_0 = arith.constant 0 : i32
    %c0_i32_1 = arith.constant 0 : i32
    return %c0_i32, %c0_i32_0 : i32, i32
  }
  func.func @transform_3(%arg0: i32) -> (i32, i32) {
    %c0_i32 = arith.constant 0 : i32
    %c0_i32_0 = arith.constant 0 : i32
    %c0_i32_1 = arith.constant 0 : i32
    return %c0_i32, %c0_i32_0 : i32, i32
  }
  func.func @transform_4(%arg0: i32) -> i32 {
    %c0_i32 = arith.constant 0 : i32
    %c0_i32_0 = arith.constant 0 : i32
    return %c0_i32 : i32
  }
  func.func @transform_5(%arg0: i32) -> (i32, i32) {
    %c0_i32 = arith.constant 0 : i32
    %c0_i32_0 = arith.constant 0 : i32
    return %arg0, %c0_i32 : i32, i32
  }
}

</mosaic_0001>

<bundles_post_ra>
// kernel: decoder_answer_forward.1
= control target key start
LH: loop header
LB: loop body
LE: loop exit
PB: predicated region body
PF: predicated region fallthrough
CT: control target
= control target key end

     0   :  { %11 = vsyncpa [#allocation4], 0  ;;  %s411_s0 = inlined_call_operand.hbm [shape: f32[4,32], index: 0, kind: input, shape index: {}]   ;;  %s412_s1 = inlined_call_operand.hbm [shape: f32[32,128], index: 1, kind: input, shape index: {}]   ;;  %s413_s2 = inlined_call_operand.vmem [shape: f32[1,128], index: 2, kind: input, shape index: {}]   ;;  %s414_s3 = inlined_call_operand.hbm [shape: f32[128,256], index: 3, kind: input, shape index: {}]   ;;  %s415_s4 = inlined_call_operand.<no memory space> [shape: f32[1], index: 4, kind: input, shape index: {}]   ;;  %s416_s5 = inlined_call_operand.vmem [shape: f32[4,256], index: 5, kind: output, shape index: {}]  }
   0x1   :  { %12 = vsyncpa [#allocation6], 0  ;;  %s354_s18 = smov [#allocation5]  }
   0x2   :  { %s28_s19 = sshll.u32 %s354_s18, 4  ;;  %s29_s19 = int_to_ptr.vmem [resolvable:$true] %s28_s19 }
   0x3   :  { %s298_s20 = scalar_lea.vmem %s29_s19, 512  ;;  %p303_p1 = scmp.lt.s32.totalorder %s29_s19, %s29_s19 }
   0x4   :  { %p299_p0 = scmp.ne.s32.totalorder %s29_s19, %s298_s20  ;;  %p304_p2 = scmp.lt.s32.totalorder %s298_s20, %s298_s20 }
   0x6   :  { %p305_p3 = por %p304_p2, %p303_p1 }
   0x8   :  { %p306_p4 = pnand %p305_p3, %p299_p0 }
   0xa   :  { %309 = shalt.err (!%p306_p4)
}
   0xb   :  { %s355_s21 = smov 128   ;;  %s356_s22 = smov 8  }
   0xc   :  { %34 = dma.hbm_to_vmem [thread:$0]  %s412_s1, 512, %s29_s19, [#allocation6], %s355_s21, %s355_s21, %s356_s22  }
   0xd   :  { %s357_s25 = smov [#allocation3]   ;;  %s358_s27 = smov [#allocation7]  }
   0xe   :  { %s19_s26 = sshll.u32 %s357_s25, 4  ;;  %s42_s28 = sshll.u32 %s358_s27, 4  ;;  %s20_s26 = int_to_ptr.vmem [resolvable:$true] %s19_s26  ;;  %s43_s28 = int_to_ptr.vmem [resolvable:$true] %s42_s28 }
   0xf   :  { %s318_s29 = scalar_lea.vmem %s20_s26, 64  ;;  %p323_p6 = scmp.lt.s32.totalorder %s20_s26, %s20_s26 }
  0x10   :  { %p319_p5 = scmp.ne.s32.totalorder %s20_s26, %s318_s29  ;;  %p324_p7 = scmp.lt.s32.totalorder %s318_s29, %s318_s29 }
  0x12   :  { %p325_p8 = por %p324_p7, %p323_p6 }
  0x14   :  { %p326_p9 = pnand %p325_p8, %p319_p5 }
  0x16   :  { %329 = shalt.err (!%p326_p9)
}
  0x17   :  { %22 = dma.hbm_to_vmem [thread:$0]  %s411_s0, 64, %s20_s26, [#allocation4]  }
  0x18   :  { %s338_s7 = scalar_lea.vmem %s43_s28, 4096  ;;  %p343_p11 = scmp.lt.s32.totalorder %s43_s28, %s43_s28 }
  0x19   :  { %p339_p10 = scmp.ne.s32.totalorder %s43_s28, %s338_s7  ;;  %p344_p12 = scmp.lt.s32.totalorder %s338_s7, %s338_s7 }
  0x1b   :  { %p345_p13 = por %p344_p12, %p343_p11 }
  0x1d   :  { %p346_p0 = pnand %p345_p13, %p339_p10 }
  0x1f   :  { %349 = shalt.err (!%p346_p0)
}
  0x20   :  { %s359_s1 = smov 256   ;;  %s360_s8 = smov 16  }
  0x21   :  { %48 = dma.hbm_to_vmem [thread:$0]  %s414_s3, 4096, %s43_s28, [#allocation6], %s359_s1, %s359_s1, %s360_s8  }
  0x22   :  { %350 = dma.done.wait [#allocation4], 64  }
  0x23   :  { %351 = vsyncadd [#allocation4], 4294967232 }
  0x24   :  { %352 = dma.done.wait [#allocation6], 4608  }
  0x25   :  { %353 = vsyncadd [#allocation6], 4294962688  ;;  %v361_v0 = vmov 0.0   ;;  %vm362_vm0 = vmmov 0   ;;  %v64_v1 = vld [vmem:[#allocation5 + $0x18] sm:$0xff]  ;;  %v63_v2 = vld [vmem:[#allocation5 + $0x10] sm:$0xff]  ;;  %v180_v43 = vstv %s415_s4 }
  0x26   :  { %270 = vmatprep.subr.mxu0 %v361_v0  ;;  %278 = vmatprep.mubr.msk.f32.mxu0 %vm362_vm0, %v361_v0  ;;  %v62_v3 = vld [vmem:[#allocation5 + $0x8] sm:$0xff]  ;;  %v178_v4 = vld [vmem:[#allocation7 + $0xf8] sm:$0xff]  ;;  %v177_v5 = vld [vmem:[#allocation7 + $0xf0] sm:$0xff]  ;;  %vm72_vm1 = vcmask 261120  }
  0x27   :  { %245 = vmatprep.mubr.f32.mxu1 %v361_v0  ;;  %271 = vmatpush3.msra.mxu0 %v64_v1  ;;  %v176_v6 = vld [vmem:[#allocation7 + $0xe8] sm:$0xff]  ;;  %v175_v7 = vld [vmem:[#allocation7 + $0xe0] sm:$0xff]  ;;  %v174_v8 = vld [vmem:[#allocation7 + $0xd8] sm:$0xff] }
  0x28   :  { %272 = vmatprep.subr.mxu0 %v361_v0  ;;  %181 = vmatprep.subr.mxu1 %v178_v4  ;;  %v61_v9 = vld [vmem:[#allocation5] sm:$0xff]  ;;  %v173_v10 = vld [vmem:[#allocation7 + $0xd0] sm:$0xff]  ;;  %v60_v11 = vld [vmem:[#allocation3] sm:$0xf] }
  0x29   :  { %273 = vmatpush3.msra.mxu0 %v63_v2  ;;  %182 = vmatpush1.msra.mxu1 %v177_v5  ;;  %v172_v12 = vld [vmem:[#allocation7 + $0xc8] sm:$0xff]  ;;  %v171_v13 = vld [vmem:[#allocation7 + $0xc0] sm:$0xff]  ;;  %v170_v14 = vld [vmem:[#allocation7 + $0xb8] sm:$0xff] }
  0x2a   :  { %274 = vmatprep.subr.mxu0 %v361_v0  ;;  %183 = vmatprep.subr.mxu1 %v176_v6  ;;  %v169_v15 = vld [vmem:[#allocation7 + $0xb0] sm:$0xff]  ;;  %v168_v16 = vld [vmem:[#allocation7 + $0xa8] sm:$0xff]  ;;  %v167_v17 = vld [vmem:[#allocation7 + $0xa0] sm:$0xff] }
  0x2b   :  { %275 = vmatpush3.msra.mxu0 %v62_v3  ;;  %184 = vmatpush1.msra.mxu1 %v175_v7  ;;  %v166_v18 = vld [vmem:[#allocation7 + $0x98] sm:$0xff]  ;;  %v165_v19 = vld [vmem:[#allocation7 + $0x90] sm:$0xff]  ;;  %v164_v20 = vld [vmem:[#allocation7 + $0x88] sm:$0xff] }
  0x2c   :  { %276 = vmatprep.subr.mxu0 %v361_v0  ;;  %185 = vmatprep.subr.mxu1 %v174_v8  ;;  %v163_v21 = vld [vmem:[#allocation7 + $0x80] sm:$0xff]  ;;  %v162_v22 = vld [vmem:[#allocation7 + $0x78] sm:$0xff]  ;;  %v161_v23 = vld [vmem:[#allocation7 + $0x70] sm:$0xff] }
  0x2d   :  { %277 = vmatpush3.msra.mxu0 %v61_v9  ;;  %186 = vmatpush1.msra.mxu1 %v173_v10  ;;  %v160_v24 = vld [vmem:[#allocation7 + $0x68] sm:$0xff]  ;;  %v159_v25 = vld [vmem:[#allocation7 + $0x60] sm:$0xff]  ;;  %v158_v26 = vld [vmem:[#allocation7 + $0x58] sm:$0xff] }
  0x2e   :  { %279 = vmatmul.mubr.msk.f32.vlgmr.msra.gmra.mxu0 %vm72_vm1, %v60_v11  ;;  %187 = vmatprep.subr.mxu1 %v172_v12  ;;  %v157_v27 = vld [vmem:[#allocation7 + $0x50] sm:$0xff]  ;;  %v156_v28 = vld [vmem:[#allocation7 + $0x48] sm:$0xff]  ;;  %v155_v29 = vld [vmem:[#allocation7 + $0x40] sm:$0xff] }
  0x2f   :  { %188 = vmatpush1.msra.mxu1 %v171_v13  ;;  %v154_v30 = vld [vmem:[#allocation7 + $0x38] sm:$0xff]  ;;  %v153_v31 = vld [vmem:[#allocation7 + $0x30] sm:$0xff]  ;;  %v152_v32 = vld [vmem:[#allocation7 + $0x28] sm:$0xff] }
  0x30   :  { %189 = vmatprep.subr.mxu1 %v170_v14  ;;  %v151_v33 = vld [vmem:[#allocation7 + $0x20] sm:$0xff]  ;;  %v150_v34 = vld [vmem:[#allocation7 + $0x18] sm:$0xff]  ;;  %v149_v35 = vld [vmem:[#allocation7 + $0x10] sm:$0xff] }
  0x31   :  { %190 = vmatpush1.msra.mxu1 %v169_v15  ;;  %v148_v36 = vld [vmem:[#allocation7 + $0x8] sm:$0xff]  ;;  %v147_v37 = vld [vmem:[#allocation7] sm:$0xff]  ;;  %v263_v38 = vld [vmem:[%s413_s2] ss:$0 sm:$0xff] }
  0x32   :  { %191 = vmatprep.subr.mxu1 %v168_v16 }
  0x33   :  { %192 = vmatpush1.msra.mxu1 %v167_v17 }
  0x34   :  { %193 = vmatprep.subr.mxu1 %v166_v18 }
  0x35   :  { %194 = vmatpush1.msra.mxu1 %v165_v19 }
  0x36   :  { %195 = vmatprep.subr.mxu1 %v164_v20 }
  0x37   :  { %196 = vmatpush1.msra.mxu1 %v163_v21 }
  0x38   :  { %197 = vmatprep.subr.mxu1 %v162_v22 }
  0x39   :  { %198 = vmatpush1.msra.mxu1 %v161_v23 }
  0x3a   :  { %199 = vmatprep.subr.mxu1 %v160_v24 }
  0x3b   :  { %200 = vmatpush1.msra.mxu1 %v159_v25 }
  0x3c   :  { %201 = vmatprep.subr.mxu1 %v158_v26 }
  0x3d   :  { %202 = vmatpush1.msra.mxu1 %v157_v27 }
  0x3e   :  { %203 = vmatprep.subr.mxu1 %v156_v28 }
  0x3f   :  { %204 = vmatpush1.msra.mxu1 %v155_v29 }
  0x40   :  { %205 = vmatprep.subr.mxu1 %v154_v30 }
  0x41   :  { %206 = vmatpush1.msra.mxu1 %v153_v31 }
  0x42   :  { %207 = vmatprep.subr.mxu1 %v152_v32 }
  0x43   :  { %208 = vmatpush1.msra.mxu1 %v151_v33 }
  0x44   :  { %209 = vmatprep.subr.mxu1 %v150_v34 }
  0x45   :  { %210 = vmatpush1.msra.mxu1 %v149_v35 }
  0x46   :  { %211 = vmatprep.subr.mxu1 %v148_v36 }
  0x47   :  { %212 = vmatpush1.msra.mxu1 %v147_v37 }
  0xee   :  { %v142_v39 = vpop.f32.mrf.mxu0 }
  0xef   :  { %v143_v40 = vadd.f32 %v263_v38, %v142_v39 }
  0xf0   :  { %v280_v41 = vpop.f32.mrf.mxu0 }
  0xf1   :  { %v146_v42 = vmax.f32 %v143_v40, 0.0 }
  0xf3   :  { %246 = vmatmul.mubr.f32.vlgmr.msra.gmra.mxu1 %v146_v42 }
 0x1b3   :  { %v247_v44 = vpop.f32.mrf.mxu1 }
 0x1b4   :  { %v248_v46 = vadd.f32 %v247_v44, %v180_v43 }
 0x1b5   :  { %v249_v45 = vpop.f32.mrf.mxu1 }
 0x1b6   :  { %v250_v47 = vadd.f32 %v249_v45, %v180_v43 }
 0x1b8   :  { %v254_v48 = vcombine.low %v248_v46, %v250_v47 }
 0x1ba   :  { %256 = vst [vmem:[%s416_s5] sm:$0xff] %v254_v48 }
 0x1bb   :  { %261 = vsyncpa [#allocation4], 1 }
 0x1bc   :  { %262 = vsyncpa [#allocation6], 1 }

</bundles_post_ra>
